<compile_context>
chip_gen: v7x
topology: tpu7x:2x2x1
jax: 0.10.0
libtpu: 0.0.40
codegen_flags: <defaults>
</compile_context>

<pallas_src>
import math
import jax
import jax.numpy as jnp
from jax.experimental import pallas as pl
from jax.experimental.pallas import tpu as pltpu

LANE = 128
_NEG_INF = -1e30


def _round_up(n, m):
    return ((n + m - 1) // m) * m


def _pad2(a, shape, value=0.0):
    return jnp.pad(a, [(0, t - s) for s, t in zip(a.shape, shape)],
                   constant_values=value)


def mlp_kernel(x_ref, w1_ref, b1_ref, w2_ref, b2_ref, o_ref, acc_ref):
    """Grid = (batch blocks, hidden blocks). The hidden axis j is the fc2
    reduction: partial fc2 products accumulate into f32 scratch and the softmax
    runs on the last hidden block."""
    j = pl.program_id(1)

    @pl.when(j == 0)
    def _():
        acc_ref[...] = jnp.zeros_like(acc_ref)

    # fc1 for this hidden slice: bf16 MXU matmul (the x cast is free VPU filler
    # inside the kernel), f32 accumulation, f32 bias add.
    h = jnp.dot(x_ref[...].astype(jnp.bfloat16), w1_ref[...],
                preferred_element_type=jnp.float32) + b1_ref[...]
    # Sigmoid as a single EUP push: sigmoid(h) = 0.5 * (1 + tanh(h / 2)).
    h = 0.5 * (1.0 + jnp.tanh(0.5 * h))
    # Partial fc2 contribution of this hidden slice.
    acc_ref[...] += jnp.dot(h.astype(jnp.bfloat16), w2_ref[...],
                            preferred_element_type=jnp.float32)

    @pl.when(j == pl.num_programs(1) - 1)
    def _():
        # Padded output columns carry a -1e30 bias, so exp() underflows to
        # exactly 0 for them and rows stay normalized over the real classes.
        logits = acc_ref[...] + b2_ref[...]
        m = jnp.max(logits, axis=-1, keepdims=True)
        e = jnp.exp(logits - m)
        denom = jnp.sum(e, axis=-1, keepdims=True)
        inv = pl.reciprocal(denom, approx=True)
        inv = inv * (2.0 - denom * inv)      # one Newton step -> ~f32-exact rows
        o_ref[...] = (e * inv).astype(o_ref.dtype)


def _vmem_budget_bytes():
    """~80% of the physical per-core VMEM (generation aware)."""
    cap = 64 << 20                           # conservative default = v7x physical VMEM
    try:
        info = pltpu.get_tpu_info()
        cap = int(getattr(info, "vmem_capacity_bytes", cap) or cap)
    except Exception:
        pass
    return int(0.8 * cap)


def _vmem_estimate(bb, in_dim, hid_tile, out_p, weight_bufs):
    x_tile = 2 * bb * in_dim * 4             # f32 x tile, double-buffered
    o_tile = 2 * bb * out_p * 4              # f32 out tile, double-buffered
    weights = weight_bufs * ((in_dim * hid_tile + hid_tile * out_p) * 2
                             + hid_tile * 4) + out_p * 4
    acc = bb * out_p * 4                     # f32 scratch accumulator
    temps = bb * (hid_tile + out_p) * 4      # live h / partial values
    return x_tile + o_tile + weights + acc + temps


def _choose_hidden_tile(in_dim, hid_p, out_p, budget):
    """Largest hidden tile whose (buffered) bf16 weights stay within ~half the
    budget; otherwise fall back to 128-wide hidden tiles (fc2 K-tiled)."""
    for n in range(1, hid_p // LANE + 1):
        if hid_p % n != 0 or (hid_p // n) % LANE != 0:
            continue
        hid_tile = hid_p // n
        bufs = 1 if n == 1 else 2
        w_bytes = bufs * ((in_dim * hid_tile + hid_tile * out_p) * 2 + hid_tile * 4)
        if w_bytes <= budget // 2:
            return hid_tile
    return LANE


def _pick_block_batch(B, in_dim, hid_tile, out_p, n_hid, budget):
    """Prefer >=4 (else >=2) batch blocks so both v7x TensorCores get work and
    DMAs overlap compute; keep blocks a multiple of 16 (full bf16 sublanes);
    shrink while the VMEM estimate is over budget."""
    block = B
    for min_blocks in (4, 2):
        cands = [c for c in (512, 256, 128, 64, 32, 16)
                 if B % c == 0 and B >= min_blocks * c]
        if cands:
            block = cands[0]
            break
    weight_bufs = 1 if n_hid == 1 else 2
    while (block > 16 and block % 2 == 0 and B % (block // 2) == 0
           and _vmem_estimate(block, in_dim, hid_tile, out_p, weight_bufs) > budget):
        block //= 2
    return block


def simple_nn_forward(x, w1, b1, w2, b2, *, block_batch=None, out_dtype=jnp.float32):
    """x: (B, input_size); w1: (input_size, hidden); w2: (hidden, output).

    Weights are stored pre-transposed relative to PyTorch's (out, in) layout so
    the forward is two MXU matmuls + VPU/EUP elementwise ops.  Only the small
    weight/bias tensors are 128-padded (on their lane dims) in the wrapper; x is
    passed through untouched.
    """
    B, in_dim = x.shape
    hidden = w1.shape[1]
    out_dim = w2.shape[1]

    hid_p = _round_up(hidden, LANE)
    out_p = _round_up(out_dim, LANE)

    # bf16 MXU weights (zero padding -> padded hidden units contribute 0 to the
    # logits); biases stay f32; padded classes get a -1e30 bias.
    w1_p = _pad2(w1, (in_dim, hid_p)).astype(jnp.bfloat16)
    b1_p = _pad2(b1.reshape(1, -1), (1, hid_p)).astype(jnp.float32)
    w2_p = _pad2(w2, (hid_p, out_p)).astype(jnp.bfloat16)
    b2_p = _pad2(b2.reshape(1, -1), (1, out_p), value=_NEG_INF).astype(jnp.float32)
    x = x.astype(jnp.float32)

    budget = _vmem_budget_bytes()
    hid_tile = _choose_hidden_tile(in_dim, hid_p, out_p, budget)
    n_hid = hid_p // hid_tile
    if block_batch is None:
        block_batch = _pick_block_batch(B, in_dim, hid_tile, out_p, n_hid, budget)
    assert B % block_batch == 0, "block_batch must divide the batch"
    grid = (B // block_batch, n_hid)

    cost = pl.CostEstimate(
        flops=2 * B * (in_dim * hid_p + hid_p * out_p),
        transcendentals=B * (hid_p + out_p + 1),   # tanh + exp + softmax recip
        bytes_accessed=(x.size * 4 + w1_p.size * 2 + w2_p.size * 2
                        + b1_p.size * 4 + b2_p.size * 4 + B * out_p * 4),
    )
    compiler_params = pltpu.CompilerParams(
        dimension_semantics=("parallel", "arbitrary"),
        vmem_limit_bytes=budget,
    )

    def run(single_buffer_resident):
        def spec(shape, index_map, constant):
            if single_buffer_resident and constant:
                return pl.BlockSpec(shape, index_map, pipeline_mode=pl.Buffered(1))
            return pl.BlockSpec(shape, index_map)

        w_const = n_hid == 1   # weights revisit the same block every grid step
        in_specs = [
            spec((block_batch, in_dim), lambda i, j: (i, 0), False),   # x (f32)
            spec((in_dim, hid_tile), lambda i, j: (0, j), w_const),    # W1
            spec((1, hid_tile), lambda i, j: (0, j), w_const),         # b1
            spec((hid_tile, out_p), lambda i, j: (j, 0), w_const),     # W2
            spec((1, out_p), lambda i, j: (0, 0), True),               # b2
        ]
        out = pl.pallas_call(
            mlp_kernel,
            out_shape=jax.ShapeDtypeStruct((B, out_p), out_dtype),
            grid_spec=pltpu.PrefetchScalarGridSpec(
                num_scalar_prefetch=0,
                grid=grid,
                in_specs=in_specs,
                out_specs=pl.BlockSpec((block_batch, out_p), lambda i, j: (i, 0)),
                scratch_shapes=[pltpu.VMEM((block_batch, out_p), jnp.float32)],
            ),
            compiler_params=compiler_params,
            cost_estimate=cost,
        )(x, w1_p, b1_p, w2_p, b2_p)
        return jax.block_until_ready(out)

    try:
        out_padded = run(True)
    except Exception:
        # Fallback for JAX versions that reject BlockSpec(pipeline_mode=...):
        # identical kernel with default (double-buffered) resident weights.
        out_padded = run(False)

    # Drop padded classes; the kernel itself only does 128-wide lane-dense stores.
    return out_padded[:, :out_dim]


def init_params(key, input_size, hidden_size, output_size):
    """Deterministic init matching SimpleNN._init_weights: U(-1/sqrt(fan_in), +)."""
    k1, k2, k3, k4 = jax.random.split(key, 4)
    lim1 = 1.0 / math.sqrt(input_size)
    lim2 = 1.0 / math.sqrt(hidden_size)
    # Stored already transposed relative to PyTorch's (out, in) convention.
    w1 = jax.random.uniform(k1, (input_size, hidden_size), jnp.float32, -lim1, lim1)
    b1 = jax.random.uniform(k2, (1, hidden_size), jnp.float32, -lim1, lim1)
    w2 = jax.random.uniform(k3, (hidden_size, output_size), jnp.float32, -lim2, lim2)
    b2 = jax.random.uniform(k4, (1, output_size), jnp.float32, -lim2, lim2)
    return w1, b1, w2, b2


if __name__ == "__main__":
    key = jax.random.PRNGKey(0)
    kx, kp = jax.random.split(key)

    batch = 8
    input_size = 16
    hidden_size = 32
    output_size = 8

    x = jax.random.normal(kx, (batch, input_size), jnp.float32)
    w1, b1, w2, b2 = init_params(kp, input_size, hidden_size, output_size)

    out = simple_nn_forward(x, w1, b1, w2, b2)
    out = jax.block_until_ready(out)

    # Reference in plain JAX with the same bf16 matmul operands / f32 accumulation.
    h_ref = jax.nn.sigmoid(
        jnp.dot(x.astype(jnp.bfloat16), w1.astype(jnp.bfloat16),
                preferred_element_type=jnp.float32) + b1)
    logits_ref = jnp.dot(h_ref.astype(jnp.bfloat16), w2.astype(jnp.bfloat16),
                         preferred_element_type=jnp.float32) + b2
    ref = jax.nn.softmax(logits_ref, axis=-1)

    assert out.shape == (batch, output_size), f"bad shape {out.shape}"
    assert jnp.allclose(out, ref, atol=2e-2, rtol=2e-2), "mismatch vs reference"
    assert jnp.allclose(jnp.sum(out, axis=-1), 1.0, atol=1e-3), \
        "softmax rows must sum to 1"

    print("KERNEL_OK")
</pallas_src>

<mosaic_0001>
module attributes {stable_mosaic.version = 11 : i64} {
  func.func @mlp_kernel(%arg0: i32, %arg1: i32, %arg2: memref<8x16xf32, #tpu.memory_space<vmem>>, %arg3: memref<16x128xbf16, #tpu.memory_space<vmem>>, %arg4: memref<1x128xf32, #tpu.memory_space<vmem>>, %arg5: memref<128x128xbf16, #tpu.memory_space<vmem>>, %arg6: memref<1x128xf32, #tpu.memory_space<vmem>>, %arg7: memref<8x128xf32, #tpu.memory_space<vmem>>, %arg8: memref<8x128xf32, #tpu.memory_space<vmem>>) attributes {dimension_semantics = [#tpu.dimension_semantics<parallel>, #tpu.dimension_semantics<arbitrary>], iteration_bounds = array<i64: 1, 1>, scalar_prefetch = 0 : i64, scratch_operands = 1 : i64, tpu.core_type = #tpu.core_type<tc>, window_params = [{transform_indices = @transform_0, window_bounds = array<i64: 8, 16>}, {pipeline_mode = #tpu.pipeline_mode<synchronous>, transform_indices = @transform_1, window_bounds = array<i64: 16, 128>}, {pipeline_mode = #tpu.pipeline_mode<synchronous>, transform_indices = @transform_2, window_bounds = array<i64: 1, 128>}, {pipeline_mode = #tpu.pipeline_mode<synchronous>, transform_indices = @transform_3, window_bounds = array<i64: 128, 128>}, {pipeline_mode = #tpu.pipeline_mode<synchronous>, transform_indices = @transform_4, window_bounds = array<i64: 1, 128>}, {transform_indices = @transform_5, window_bounds = array<i64: 8, 128>}]} {
    %c0_i32 = arith.constant 0 : i32
    %0 = arith.cmpi eq, %arg1, %c0_i32 : i32
    %1 = arith.extui %0 : i1 to i32
    %c0_i32_0 = arith.constant 0 : i32
    %2 = arith.cmpi ne, %1, %c0_i32_0 : i32
    scf.if %2 {
      %cst_18 = arith.constant 0.000000e+00 : f32
      %26 = vector.broadcast %cst_18 : f32 to vector<8x128xf32>
      %c0_19 = arith.constant 0 : index
      %c0_20 = arith.constant 0 : index
      %27 = vector.load %arg8[%c0_19, %c0_20] : memref<8x128xf32, #tpu.memory_space<vmem>>, vector<8x128xf32>
      tpu.vector_store %arg8[%c0_19, %c0_20], %26 {strides = array<i32>} : memref<8x128xf32, #tpu.memory_space<vmem>>, vector<8x128xf32>,
    } else {
    }
    %c0 = arith.constant 0 : index
    %c0_1 = arith.constant 0 : index
    %3 = vector.load %arg2[%c0, %c0_1] : memref<8x16xf32, #tpu.memory_space<vmem>>, vector<8x16xf32>
    %4 = arith.truncf %3 : vector<8x16xf32> to vector<8x16xbf16>
    %c0_2 = arith.constant 0 : index
    %c0_3 = arith.constant 0 : index
    %5 = vector.load %arg3[%c0_2, %c0_3] : memref<16x128xbf16, #tpu.memory_space<vmem>>, vector<16x128xbf16>
    %cst = arith.constant dense<0.000000e+00> : vector<8x128xf32>
    %6 = tpu.matmul %4, %5, %cst {dimension_numbers = #tpu.dot_dimension_numbers<[1], [0], [0], [1], [0, 0, 1, 1], [], []>} : vector<8x16xbf16>, vector<16x128xbf16>, vector<8x128xf32> -> vector<8x128xf32>
    %c0_4 = arith.constant 0 : index
    %c0_5 = arith.constant 0 : index
    %7 = vector.load %arg4[%c0_4, %c0_5] : memref<1x128xf32, #tpu.memory_space<vmem>>, vector<1x128xf32>
    %8 = vector.broadcast %7 : vector<1x128xf32> to vector<8x128xf32>
    %9 = arith.addf %6, %8 : vector<8x128xf32>
    %cst_6 = arith.constant 5.000000e-01 : f32
    %10 = vector.broadcast %cst_6 : f32 to vector<8x128xf32>
    %11 = arith.mulf %10, %9 : vector<8x128xf32>
    %12 = math.tanh %11 : vector<8x128xf32>
    %cst_7 = arith.constant 1.000000e+00 : f32
    %13 = vector.broadcast %cst_7 : f32 to vector<8x128xf32>
    %14 = arith.addf %13, %12 : vector<8x128xf32>
    %cst_8 = arith.constant 5.000000e-01 : f32
    %15 = vector.broadcast %cst_8 : f32 to vector<8x128xf32>
    %16 = arith.mulf %15, %14 : vector<8x128xf32>
    %c0_9 = arith.constant 0 : index
    %c0_10 = arith.constant 0 : index
    %17 = vector.load %arg8[%c0_9, %c0_10] : memref<8x128xf32, #tpu.memory_space<vmem>>, vector<8x128xf32>
    %18 = arith.truncf %16 : vector<8x128xf32> to vector<8x128xbf16>
    %c0_11 = arith.constant 0 : index
    %c0_12 = arith.constant 0 : index
    %19 = vector.load %arg5[%c0_11, %c0_12] : memref<128x128xbf16, #tpu.memory_space<vmem>>, vector<128x128xbf16>
    %cst_13 = arith.constant dense<0.000000e+00> : vector<8x128xf32>
    %20 = tpu.matmul %18, %19, %cst_13 {dimension_numbers = #tpu.dot_dimension_numbers<[1], [0], [0], [1], [0, 0, 1, 1], [], []>} : vector<8x128xbf16>, vector<128x128xbf16>, vector<8x128xf32> -> vector<8x128xf32>
    %21 = arith.addf %17, %20 : vector<8x128xf32>
    %c0_14 = arith.constant 0 : index
    %c0_15 = arith.constant 0 : index
    %22 = vector.load %arg8[%c0_14, %c0_15] : memref<8x128xf32, #tpu.memory_space<vmem>>, vector<8x128xf32>
    tpu.vector_store %arg8[%c0_14, %c0_15], %21 {strides = array<i32>} : memref<8x128xf32, #tpu.memory_space<vmem>>, vector<8x128xf32>,
    %c0_i32_16 = arith.constant 0 : i32
    %23 = arith.cmpi eq, %arg1, %c0_i32_16 : i32
    %24 = arith.extui %23 : i1 to i32
    %c0_i32_17 = arith.constant 0 : i32
    %25 = arith.cmpi ne, %24, %c0_i32_17 : i32
    scf.if %25 {
      %c0_18 = arith.constant 0 : index
      %c0_19 = arith.constant 0 : index
      %26 = vector.load %arg8[%c0_18, %c0_19] : memref<8x128xf32, #tpu.memory_space<vmem>>, vector<8x128xf32>
      %c0_20 = arith.constant 0 : index
      %c0_21 = arith.constant 0 : index
      %27 = vector.load %arg6[%c0_20, %c0_21] : memref<1x128xf32, #tpu.memory_space<vmem>>, vector<1x128xf32>
      %28 = vector.broadcast %27 : vector<1x128xf32> to vector<8x128xf32>
      %29 = arith.addf %26, %28 : vector<8x128xf32>
      %cst_22 = arith.constant dense<0xFF800000> : vector<8xf32>
      %30 = vector.multi_reduction <maximumf>, %29, %cst_22 [1] : vector<8x128xf32> to vector<8xf32>
      %31 = vector.shape_cast %30 : vector<8xf32> to vector<8x1xf32>
      %32 = vector.broadcast %31 : vector<8x1xf32> to vector<8x128xf32>
      %33 = arith.subf %29, %32 : vector<8x128xf32>
      %34 = math.exp %33 : vector<8x128xf32>
      %cst_23 = arith.constant dense<0.000000e+00> : vector<8xf32>
      %35 = vector.multi_reduction <add>, %34, %cst_23 [1] : vector<8x128xf32> to vector<8xf32>
      %36 = vector.shape_cast %35 : vector<8xf32> to vector<8x1xf32>
      %37 = tpu.reciprocal %36 {approx = true} : vector<8x1xf32> -> vector<8x1xf32>
      %38 = arith.mulf %36, %37 : vector<8x1xf32>
      %cst_24 = arith.constant 2.000000e+00 : f32
      %39 = vector.broadcast %cst_24 : f32 to vector<8x1xf32>
      %40 = arith.subf %39, %38 : vector<8x1xf32>
      %41 = arith.mulf %37, %40 : vector<8x1xf32>
      %42 = vector.broadcast %41 : vector<8x1xf32> to vector<8x128xf32>
      %43 = arith.mulf %34, %42 : vector<8x128xf32>
      %c0_25 = arith.constant 0 : index
      %c0_26 = arith.constant 0 : index
      %44 = vector.load %arg7[%c0_25, %c0_26] : memref<8x128xf32, #tpu.memory_space<vmem>>, vector<8x128xf32>
      tpu.vector_store %arg7[%c0_25, %c0_26], %43 {strides = array<i32>} : memref<8x128xf32, #tpu.memory_space<vmem>>, vector<8x128xf32>,
    } else {
    }
    return
  }
  func.func @transform_0(%arg0: i32, %arg1: i32) -> (i32, i32) {
    %c0_i32 = arith.constant 0 : i32
    %c0_i32_0 = arith.constant 0 : i32
    return %arg0, %c0_i32 : i32, i32
  }
  func.func @transform_1(%arg0: i32, %arg1: i32) -> (i32, i32) {
    %c0_i32 = arith.constant 0 : i32
    %c0_i32_0 = arith.constant 0 : i32
    return %c0_i32, %arg1 : i32, i32
  }
  func.func @transform_2(%arg0: i32, %arg1: i32) -> (i32, i32) {
    %c0_i32 = arith.constant 0 : i32
    %c0_i32_0 = arith.constant 0 : i32
    return %c0_i32, %arg1 : i32, i32
  }
  func.func @transform_3(%arg0: i32, %arg1: i32) -> (i32, i32) {
    %c0_i32 = arith.constant 0 : i32
    %c0_i32_0 = arith.constant 0 : i32
    return %arg1, %c0_i32 : i32, i32
  }
  func.func @transform_4(%arg0: i32, %arg1: i32) -> (i32, i32) {
    %c0_i32 = arith.constant 0 : i32
    %c0_i32_0 = arith.constant 0 : i32
    %c0_i32_1 = arith.constant 0 : i32
    return %c0_i32, %c0_i32_0 : i32, i32
  }
  func.func @transform_5(%arg0: i32, %arg1: i32) -> (i32, i32) {
    %c0_i32 = arith.constant 0 : i32
    %c0_i32_0 = arith.constant 0 : i32
    return %arg0, %c0_i32 : i32, i32
  }
}

module attributes {stable_mosaic.version = 11 : i64} {
  func.func @mlp_kernel(%arg0: i32, %arg1: i32, %arg2: memref<8x16xf32, #tpu.memory_space<vmem>>, %arg3: memref<16x128xbf16, #tpu.memory_space<vmem>>, %arg4: memref<1x128xf32, #tpu.memory_space<vmem>>, %arg5: memref<128x128xbf16, #tpu.memory_space<vmem>>, %arg6: memref<1x128xf32, #tpu.memory_space<vmem>>, %arg7: memref<8x128xf32, #tpu.memory_space<vmem>>, %arg8: memref<8x128xf32, #tpu.memory_space<vmem>>) attributes {dimension_semantics = [#tpu.dimension_semantics<parallel>, #tpu.dimension_semantics<arbitrary>], iteration_bounds = array<i64: 1, 1>, scalar_prefetch = 0 : i64, scratch_operands = 1 : i64, tpu.core_type = #tpu.core_type<tc>, window_params = [{transform_indices = @transform_0, window_bounds = array<i64: 8, 16>}, {transform_indices = @transform_1, window_bounds = array<i64: 16, 128>}, {transform_indices = @transform_2, window_bounds = array<i64: 1, 128>}, {transform_indices = @transform_3, window_bounds = array<i64: 128, 128>}, {pipeline_mode = #tpu.pipeline_mode<synchronous>, transform_indices = @transform_4, window_bounds = array<i64: 1, 128>}, {transform_indices = @transform_5, window_bounds = array<i64: 8, 128>}]} {
    %c0_i32 = arith.constant 0 : i32
    %0 = arith.cmpi eq, %arg1, %c0_i32 : i32
    %1 = arith.extui %0 : i1 to i32
    %c0_i32_0 = arith.constant 0 : i32
    %2 = arith.cmpi ne, %1, %c0_i32_0 : i32
    scf.if %2 {
      %cst_18 = arith.constant 0.000000e+00 : f32
      %26 = vector.broadcast %cst_18 : f32 to vector<8x128xf32>
      %c0_19 = arith.constant 0 : index
      %c0_20 = arith.constant 0 : index
      %27 = vector.load %arg8[%c0_19, %c0_20] : memref<8x128xf32, #tpu.memory_space<vmem>>, vector<8x128xf32>
      tpu.vector_store %arg8[%c0_19, %c0_20], %26 {strides = array<i32>} : memref<8x128xf32, #tpu.memory_space<vmem>>, vector<8x128xf32>,
    } else {
    }
    %c0 = arith.constant 0 : index
    %c0_1 = arith.constant 0 : index
    %3 = vector.load %arg2[%c0, %c0_1] : memref<8x16xf32, #tpu.memory_space<vmem>>, vector<8x16xf32>
    %4 = arith.truncf %3 : vector<8x16xf32> to vector<8x16xbf16>
    %c0_2 = arith.constant 0 : index
    %c0_3 = arith.constant 0 : index
    %5 = vector.load %arg3[%c0_2, %c0_3] : memref<16x128xbf16, #tpu.memory_space<vmem>>, vector<16x128xbf16>
    %cst = arith.constant dense<0.000000e+00> : vector<8x128xf32>
    %6 = tpu.matmul %4, %5, %cst {dimension_numbers = #tpu.dot_dimension_numbers<[1], [0], [0], [1], [0, 0, 1, 1], [], []>} : vector<8x16xbf16>, vector<16x128xbf16>, vector<8x128xf32> -> vector<8x128xf32>
    %c0_4 = arith.constant 0 : index
    %c0_5 = arith.constant 0 : index
    %7 = vector.load %arg4[%c0_4, %c0_5] : memref<1x128xf32, #tpu.memory_space<vmem>>, vector<1x128xf32>
    %8 = vector.broadcast %7 : vector<1x128xf32> to vector<8x128xf32>
    %9 = arith.addf %6, %8 : vector<8x128xf32>
    %cst_6 = arith.constant 5.000000e-01 : f32
    %10 = vector.broadcast %cst_6 : f32 to vector<8x128xf32>
    %11 = arith.mulf %10, %9 : vector<8x128xf32>
    %12 = math.tanh %11 : vector<8x128xf32>
    %cst_7 = arith.constant 1.000000e+00 : f32
    %13 = vector.broadcast %cst_7 : f32 to vector<8x128xf32>
    %14 = arith.addf %13, %12 : vector<8x128xf32>
    %cst_8 = arith.constant 5.000000e-01 : f32
    %15 = vector.broadcast %cst_8 : f32 to vector<8x128xf32>
    %16 = arith.mulf %15, %14 : vector<8x128xf32>
    %c0_9 = arith.constant 0 : index
    %c0_10 = arith.constant 0 : index
    %17 = vector.load %arg8[%c0_9, %c0_10] : memref<8x128xf32, #tpu.memory_space<vmem>>, vector<8x128xf32>
    %18 = arith.truncf %16 : vector<8x128xf32> to vector<8x128xbf16>
    %c0_11 = arith.constant 0 : index
    %c0_12 = arith.constant 0 : index
    %19 = vector.load %arg5[%c0_11, %c0_12] : memref<128x128xbf16, #tpu.memory_space<vmem>>, vector<128x128xbf16>
    %cst_13 = arith.constant dense<0.000000e+00> : vector<8x128xf32>
    %20 = tpu.matmul %18, %19, %cst_13 {dimension_numbers = #tpu.dot_dimension_numbers<[1], [0], [0], [1], [0, 0, 1, 1], [], []>} : vector<8x128xbf16>, vector<128x128xbf16>, vector<8x128xf32> -> vector<8x128xf32>
    %21 = arith.addf %17, %20 : vector<8x128xf32>
    %c0_14 = arith.constant 0 : index
    %c0_15 = arith.constant 0 : index
    %22 = vector.load %arg8[%c0_14, %c0_15] : memref<8x128xf32, #tpu.memory_space<vmem>>, vector<8x128xf32>
    tpu.vector_store %arg8[%c0_14, %c0_15], %21 {strides = array<i32>} : memref<8x128xf32, #tpu.memory_space<vmem>>, vector<8x128xf32>,
    %c0_i32_16 = arith.constant 0 : i32
    %23 = arith.cmpi eq, %arg1, %c0_i32_16 : i32
    %24 = arith.extui %23 : i1 to i32
    %c0_i32_17 = arith.constant 0 : i32
    %25 = arith.cmpi ne, %24, %c0_i32_17 : i32
    scf.if %25 {
      %c0_18 = arith.constant 0 : index
      %c0_19 = arith.constant 0 : index
      %26 = vector.load %arg8[%c0_18, %c0_19] : memref<8x128xf32, #tpu.memory_space<vmem>>, vector<8x128xf32>
      %c0_20 = arith.constant 0 : index
      %c0_21 = arith.constant 0 : index
      %27 = vector.load %arg6[%c0_20, %c0_21] : memref<1x128xf32, #tpu.memory_space<vmem>>, vector<1x128xf32>
      %28 = vector.broadcast %27 : vector<1x128xf32> to vector<8x128xf32>
      %29 = arith.addf %26, %28 : vector<8x128xf32>
      %cst_22 = arith.constant dense<0xFF800000> : vector<8xf32>
      %30 = vector.multi_reduction <maximumf>, %29, %cst_22 [1] : vector<8x128xf32> to vector<8xf32>
      %31 = vector.shape_cast %30 : vector<8xf32> to vector<8x1xf32>
      %32 = vector.broadcast %31 : vector<8x1xf32> to vector<8x128xf32>
      %33 = arith.subf %29, %32 : vector<8x128xf32>
      %34 = math.exp %33 : vector<8x128xf32>
      %cst_23 = arith.constant dense<0.000000e+00> : vector<8xf32>
      %35 = vector.multi_reduction <add>, %34, %cst_23 [1] : vector<8x128xf32> to vector<8xf32>
      %36 = vector.shape_cast %35 : vector<8xf32> to vector<8x1xf32>
      %37 = tpu.reciprocal %36 {approx = true} : vector<8x1xf32> -> vector<8x1xf32>
      %38 = arith.mulf %36, %37 : vector<8x1xf32>
      %cst_24 = arith.constant 2.000000e+00 : f32
      %39 = vector.broadcast %cst_24 : f32 to vector<8x1xf32>
      %40 = arith.subf %39, %38 : vector<8x1xf32>
      %41 = arith.mulf %37, %40 : vector<8x1xf32>
      %42 = vector.broadcast %41 : vector<8x1xf32> to vector<8x128xf32>
      %43 = arith.mulf %34, %42 : vector<8x128xf32>
      %c0_25 = arith.constant 0 : index
      %c0_26 = arith.constant 0 : index
      %44 = vector.load %arg7[%c0_25, %c0_26] : memref<8x128xf32, #tpu.memory_space<vmem>>, vector<8x128xf32>
      tpu.vector_store %arg7[%c0_25, %c0_26], %43 {strides = array<i32>} : memref<8x128xf32, #tpu.memory_space<vmem>>, vector<8x128xf32>,
    } else {
    }
    return
  }
  func.func @transform_0(%arg0: i32, %arg1: i32) -> (i32, i32) {
    %c0_i32 = arith.constant 0 : i32
    %c0_i32_0 = arith.constant 0 : i32
    return %arg0, %c0_i32 : i32, i32
  }
  func.func @transform_1(%arg0: i32, %arg1: i32) -> (i32, i32) {
    %c0_i32 = arith.constant 0 : i32
    %c0_i32_0 = arith.constant 0 : i32
    return %c0_i32, %arg1 : i32, i32
  }
  func.func @transform_2(%arg0: i32, %arg1: i32) -> (i32, i32) {
    %c0_i32 = arith.constant 0 : i32
    %c0_i32_0 = arith.constant 0 : i32
    return %c0_i32, %arg1 : i32, i32
  }
  func.func @transform_3(%arg0: i32, %arg1: i32) -> (i32, i32) {
    %c0_i32 = arith.constant 0 : i32
    %c0_i32_0 = arith.constant 0 : i32
    return %arg1, %c0_i32 : i32, i32
  }
  func.func @transform_4(%arg0: i32, %arg1: i32) -> (i32, i32) {
    %c0_i32 = arith.constant 0 : i32
    %c0_i32_0 = arith.constant 0 : i32
    %c0_i32_1 = arith.constant 0 : i32
    return %c0_i32, %c0_i32_0 : i32, i32
  }
  func.func @transform_5(%arg0: i32, %arg1: i32) -> (i32, i32) {
    %c0_i32 = arith.constant 0 : i32
    %c0_i32_0 = arith.constant 0 : i32
    return %arg0, %c0_i32 : i32, i32
  }
}

</mosaic_0001>

<bundles_post_ra>
// kernel: tpu_custom_call.1
= control target key start
LH: loop header
LB: loop body
LE: loop exit
PB: predicated region body
PF: predicated region fallthrough
CT: control target
= control target key end

     0   :  { %10 = vsyncpa [#allocation4], 0  ;;  %s544_s0 = inlined_call_operand.hbm [shape: f32[8,16], index: 0, kind: input, shape index: {}]   ;;  %s545_s1 = inlined_call_operand.hbm [shape: bf16[16,128], index: 1, kind: input, shape index: {}]   ;;  %s546_s2 = inlined_call_operand.vmem [shape: f32[1,128], index: 2, kind: input, shape index: {}]   ;;  %s547_s3 = inlined_call_operand.hbm [shape: bf16[128,128], index: 3, kind: input, shape index: {}]   ;;  %s548_s4 = inlined_call_operand.vmem [shape: f32[1,128], index: 4, kind: input, shape index: {}]   ;;  %s549_s5 = inlined_call_operand.hbm [shape: f32[8,128], index: 5, kind: output, shape index: {}]  }
   0x1   :  { %11 = vsyncpa [#allocation7], 0 }
   0x2   :  { %12 = vsyncpa [#allocation5], 0  ;;  %s446_s18 = smov [#allocation6]   ;;  %s352_s22 = scalar_lea.hbm %s545_s1, 128 }
   0x3   :  { %s28_s19 = sshll.u32 %s446_s18, 4  ;;  %p353_p0 = scmp.ne.s32.totalorder %s545_s1, %s352_s22  ;;  %s29_s19 = int_to_ptr.vmem [resolvable:$true] %s28_s19 }
   0x4   :  { %p356_p1 = scmp.lt.u32.totalorder %s352_s22, %s545_s1 }
   0x6   :  { %p358_p2 = pnand %p356_p1, %p353_p0 }
   0x8   :  { %361 = shalt.err (!%p358_p2)
}
   0x9   :  { %s362_s27 = scalar_lea.vmem %s29_s19, 128  ;;  %p367_p4 = scmp.lt.s32.totalorder %s29_s19, %s29_s19 }
   0xa   :  { %p363_p3 = scmp.ne.s32.totalorder %s29_s19, %s362_s27  ;;  %p368_p5 = scmp.lt.s32.totalorder %s362_s27, %s362_s27 }
   0xc   :  { %p369_p6 = por %p368_p5, %p367_p4 }
   0xe   :  { %p370_p7 = pnand %p369_p6, %p363_p3 }
  0x10   :  { %373 = shalt.err (!%p370_p7)
}
  0x11   :  { %s447_s28 = smov 64   ;;  %s448_s29 = smov 4  }
  0x12   :  { %34 = dma.hbm_to_vmem [thread:$0]  %s545_s1, 128, %s29_s19, [#allocation7], %s447_s28, %s447_s28, %s448_s29  }
  0x13   :  { %s449_s7 = smov [#allocation3]   ;;  %s450_s9 = smov [#allocation8]  }
  0x14   :  { %s19_s8 = sshll.u32 %s449_s7, 4  ;;  %s42_s10 = sshll.u32 %s450_s9, 4  ;;  %s20_s8 = int_to_ptr.vmem [resolvable:$true] %s19_s8  ;;  %s43_s10 = int_to_ptr.vmem [resolvable:$true] %s42_s10 }
  0x15   :  { %s374_s13 = scalar_lea.hbm %s544_s0, 128 }
  0x16   :  { %p375_p8 = scmp.ne.s32.totalorder %s544_s0, %s374_s13  ;;  %p378_p9 = scmp.lt.u32.totalorder %s374_s13, %s544_s0 }
  0x18   :  { %p380_p10 = pnand %p378_p9, %p375_p8 }
  0x1a   :  { %383 = shalt.err (!%p380_p10)
}
  0x1b   :  { %s384_s1 = scalar_lea.vmem %s20_s8, 128  ;;  %p389_p12 = scmp.lt.s32.totalorder %s20_s8, %s20_s8 }
  0x1c   :  { %p385_p11 = scmp.ne.s32.totalorder %s20_s8, %s384_s1  ;;  %p390_p13 = scmp.lt.s32.totalorder %s384_s1, %s384_s1 }
  0x1e   :  { %p391_p0 = por %p390_p13, %p389_p12 }
  0x20   :  { %p392_p1 = pnand %p391_p0, %p385_p11 }
  0x22   :  { %395 = shalt.err (!%p392_p1)
}
  0x23   :  { %22 = dma.hbm_to_vmem [thread:$0]  %s544_s0, 128, %s20_s8, [#allocation4]  }
  0x24   :  { %s396_s22 = scalar_lea.hbm %s547_s3, 1024 }
  0x25   :  { %p397_p2 = scmp.ne.s32.totalorder %s547_s3, %s396_s22  ;;  %p400_p3 = scmp.lt.u32.totalorder %s396_s22, %s547_s3 }
  0x27   :  { %p402_p4 = pnand %p400_p3, %p397_p2 }
  0x29   :  { %405 = shalt.err (!%p402_p4)
}
  0x2a   :  { %s406_s27 = scalar_lea.vmem %s43_s10, 1024  ;;  %p411_p6 = scmp.lt.s32.totalorder %s43_s10, %s43_s10 }
  0x2b   :  { %p407_p5 = scmp.ne.s32.totalorder %s43_s10, %s406_s27  ;;  %p412_p7 = scmp.lt.s32.totalorder %s406_s27, %s406_s27 }
  0x2d   :  { %p413_p8 = por %p412_p7, %p411_p6 }
  0x2f   :  { %p414_p9 = pnand %p413_p8, %p407_p5 }
  0x31   :  { %417 = shalt.err (!%p414_p9)
}
  0x32   :  { %48 = dma.hbm_to_vmem [thread:$0]  %s547_s3, 1024, %s43_s10, [#allocation7], %s447_s28, %s447_s28, %s448_s29  }
  0x33   :  { %440 = dma.done.wait [#allocation4], 128  }
  0x34   :  { %441 = vsyncadd [#allocation4], 4294967168 }
  0x35   :  { %442 = dma.done.wait [#allocation7], 1152  }
  0x36   :  { %443 = vsyncadd [#allocation7], 4294966144  ;;  %v451_v0 = vmov 0.0   ;;  %vm452_vm0 = vmmov 0   ;;  %v337_v1 = vld [vmem:[#allocation6] sm:$0xff]   ;;  %v66_v2 = vld [vmem:[#allocation3] sm:$0xff] }
  0x37   :  { %303 = vmatprep.subr.bf16.mxu0 %v451_v0  ;;  %305 = vmatprep.mubr.msk.bf16.mxu0 %vm452_vm0, %v451_v0  ;;  %v67_v3 = vpack.c.bf16 %v66_v2, %v66_v2  ;;  %vm83_vm1 = vcmask 130048   ;;  %v338_v4 = vld [vmem:[#allocation8] sm:$0xff]   ;;  %v339_v5 = vld [vmem:[#allocation8 + $0x8] sm:$0xff]   ;;  %v340_v6 = vld [vmem:[#allocation8 + $0x10] sm:$0xff]  }
  0x38   :  { %309 = vmatprep.subr.bf16.mxu1 %v451_v0  ;;  %325 = vmatprep.mubr.msk.bf16.mxu1 %vm452_vm0, %v451_v0  ;;  %v341_v7 = vld [vmem:[#allocation8 + $0x18] sm:$0xff]   ;;  %v342_v8 = vld [vmem:[#allocation8 + $0x20] sm:$0xff]   ;;  %v343_v9 = vld [vmem:[#allocation8 + $0x28] sm:$0xff]  }
  0x39   :  { %304 = vmatpush3.bf16.msra.mxu0 %v337_v1  ;;  %310 = vmatpush3.bf16.msra.mxu1 %v338_v4  ;;  %v344_v10 = vld [vmem:[#allocation8 + $0x30] sm:$0xff]   ;;  %v345_v11 = vld [vmem:[#allocation8 + $0x38] sm:$0xff]  }
  0x3a   :  { %311 = vmatprep.subr.bf16.mxu1 %v451_v0  ;;  %v280_v12 = vld [vmem:[%s546_s2] ss:$0 sm:$0xff]  ;;  %s453_s2 = smov [#allocation9]  }
  0x3b   :  { %v291_v23 = vld [vmem:[%s548_s4] ss:$0 sm:$0xff]  ;;  %s270_s7 = sshll.u32 %s453_s2, 4  ;;  %s271_s7 = int_to_ptr.vmem [resolvable:$true] %s270_s7 }
  0x3c   :  { %306 = vmatmul.mubr.msk.bf16.vlgmr.msra.gmra.mrb[0].mxu0 %vm83_vm1, %v67_v3  ;;  %s418_s4 = scalar_lea.vmem %s271_s7, 128  ;;  %p423_p11 = scmp.lt.s32.totalorder %s271_s7, %s271_s7 }
  0x3d   :  { %312 = vmatpush3.bf16.msra.mxu1 %v339_v5  ;;  %p419_p10 = scmp.ne.s32.totalorder %s271_s7, %s418_s4  ;;  %p424_p12 = scmp.lt.s32.totalorder %s418_s4, %s418_s4 }
  0x3e   :  { %313 = vmatprep.subr.bf16.mxu1 %v451_v0 }
  0x3f   :  { %p425_p13 = por %p424_p12, %p423_p11 }
  0x41   :  { %314 = vmatpush3.bf16.msra.mxu1 %v340_v6  ;;  %p426_p0 = pnand %p425_p13, %p419_p10 }
  0x42   :  { %315 = vmatprep.subr.bf16.mxu1 %v451_v0 }
  0x45   :  { %316 = vmatpush3.bf16.msra.mxu1 %v341_v7 }
  0x46   :  { %317 = vmatprep.subr.bf16.mxu1 %v451_v0 }
  0x49   :  { %318 = vmatpush3.bf16.msra.mxu1 %v342_v8 }
  0x4a   :  { %319 = vmatprep.subr.bf16.mxu1 %v451_v0 }
  0x4d   :  { %320 = vmatpush3.bf16.msra.mxu1 %v343_v9 }
  0x4e   :  { %321 = vmatprep.subr.bf16.mxu1 %v451_v0 }
  0x51   :  { %322 = vmatpush3.bf16.msra.mxu1 %v344_v10 }
  0x52   :  { %323 = vmatprep.subr.bf16.mxu1 %v451_v0 }
  0x55   :  { %324 = vmatpush3.bf16.msra.mxu1 %v345_v11 }
 0x10f   :  { %v121_v13 = vpop.f32.mrb[0].mxu0 }
 0x110   :  { %v122_v14 = vadd.f32 %v280_v12, %v121_v13  ;;  %v307_v15 = vpop.f32.mrb[1].mxu0 }
 0x111   :  { %v124_v16 = vpop.f32.mrb[2].mxu0 }
 0x112   :  { %v127_v17 = vmul.f32 0.5, %v122_v14  ;;  %v308_v18 = vpop.f32.mrb[3].mxu0 }
 0x114   :  { %346 = vtanh.f32 %v127_v17 }
 0x11e   :  { %v347_v19 = vpop.eup %346 }
 0x11f   :  { %v129_v20 = vadd.f32 1.0, %v347_v19 }
 0x121   :  { %v130_v21 = vmul.f32 0.5, %v129_v20 }
 0x123   :  { %v132_v22 = vpack.c.bf16 %v130_v21, %v130_v21 }
 0x125   :  { %326 = vmatmul.mubr.bf16.vlgmr.msra.gmra.mrb[0].mxu1 %v132_v22 }
 0x1f8   :  { %v231_v24 = vpop.f32.mrb[0].mxu1 }
 0x1f9   :  { %v250_v25 = vadd.f32 %v291_v23, %v231_v24  ;;  %v327_v26 = vpop.f32.mrb[1].mxu1 }
 0x1fa   :  { %v234_v27 = vpop.f32.mrb[2].mxu1 }
 0x1fb   :  { %251 = vmax.xlane.f32.xlu0 %v250_v25  ;;  %v328_v28 = vpop.f32.mrb[3].mxu1 }
 0x288   :  { %v252_v29 = vpop.xlane.xlu0 %251 }
 0x289   :  { %v253_v30 = vsub.f32 %v250_v25, %v252_v29 }
 0x28b   :  { %v254_v31 = vmul.f32 1.442695, %v253_v30 }
 0x28d   :  { %348 = vpow2.f32 %v254_v31 }
 0x297   :  { %v349_v32 = vpop.eup %348 }
 0x298   :  { %256 = vadd.xlane.f32.xlu0 %v349_v32 }
 0x325   :  { %v257_v33 = vpop.xlane.xlu0 %256 }
 0x326   :  { %350 = vrcp.f32 %v257_v33 }
 0x330   :  { %v351_v34 = vpop.eup %350 }
 0x331   :  { %v259_v35 = vmul.f32 %v351_v34, %v257_v33 }
 0x333   :  { %v260_v36 = vsub.f32 2.0, %v259_v35 }
 0x335   :  { %v261_v37 = vmul.f32 %v351_v34, %v260_v36 }
 0x337   :  { %v262_v38 = vmul.f32 %v349_v32, %v261_v37 }
 0x339   :  { %263 = vst [vmem:[#allocation9] sm:$0xff] %v262_v38 }
 0x33a   :  { %429 = shalt.err (!%p426_p0)
}
 0x33b   :  { %s430_s10 = scalar_lea.hbm %s549_s5, 128 }
 0x33c   :  { %p431_p1 = scmp.ne.s32.totalorder %s549_s5, %s430_s10  ;;  %p434_p2 = scmp.lt.u32.totalorder %s430_s10, %s549_s5 }
 0x33e   :  { %p436_p3 = pnand %p434_p2, %p431_p1 }
 0x340   :  { %439 = shalt.err (!%p436_p3)
}
 0x341   :  { %273 = dma.vmem_to_hbm [thread:$0]  %s271_s7, 128, %s549_s5, [#allocation5]  }
 0x342   :  { %444 = dma.done.wait [#allocation5], 128  }
 0x343   :  { %445 = vsyncadd [#allocation5], 4294967168 }
 0x344   :  { %277 = vsyncpa [#allocation4], 1 }
 0x345   :  { %278 = vsyncpa [#allocation7], 1 }
 0x346   :  { %279 = vsyncpa [#allocation5], 1 }

// kernel: tpu_custom_call.1
= control target key start
LH: loop header
LB: loop body
LE: loop exit
PB: predicated region body
PF: predicated region fallthrough
CT: control target
= control target key end

     0   :  { %10 = vsyncpa [#allocation4], 0  ;;  %s544_s0 = inlined_call_operand.hbm [shape: f32[8,16], index: 0, kind: input, shape index: {}]   ;;  %s545_s1 = inlined_call_operand.hbm [shape: bf16[16,128], index: 1, kind: input, shape index: {}]   ;;  %s546_s2 = inlined_call_operand.vmem [shape: f32[1,128], index: 2, kind: input, shape index: {}]   ;;  %s547_s3 = inlined_call_operand.hbm [shape: bf16[128,128], index: 3, kind: input, shape index: {}]   ;;  %s548_s4 = inlined_call_operand.vmem [shape: f32[1,128], index: 4, kind: input, shape index: {}]   ;;  %s549_s5 = inlined_call_operand.hbm [shape: f32[8,128], index: 5, kind: output, shape index: {}]  }
   0x1   :  { %11 = vsyncpa [#allocation7], 0 }
   0x2   :  { %12 = vsyncpa [#allocation5], 0  ;;  %s446_s18 = smov [#allocation6]   ;;  %s352_s22 = scalar_lea.hbm %s545_s1, 128 }
   0x3   :  { %s28_s19 = sshll.u32 %s446_s18, 4  ;;  %p353_p0 = scmp.ne.s32.totalorder %s545_s1, %s352_s22  ;;  %s29_s19 = int_to_ptr.vmem [resolvable:$true] %s28_s19 }
   0x4   :  { %p356_p1 = scmp.lt.u32.totalorder %s352_s22, %s545_s1 }
   0x6   :  { %p358_p2 = pnand %p356_p1, %p353_p0 }
   0x8   :  { %361 = shalt.err (!%p358_p2)
}
   0x9   :  { %s362_s27 = scalar_lea.vmem %s29_s19, 128  ;;  %p367_p4 = scmp.lt.s32.totalorder %s29_s19, %s29_s19 }
   0xa   :  { %p363_p3 = scmp.ne.s32.totalorder %s29_s19, %s362_s27  ;;  %p368_p5 = scmp.lt.s32.totalorder %s362_s27, %s362_s27 }
   0xc   :  { %p369_p6 = por %p368_p5, %p367_p4 }
   0xe   :  { %p370_p7 = pnand %p369_p6, %p363_p3 }
  0x10   :  { %373 = shalt.err (!%p370_p7)
}
  0x11   :  { %s447_s28 = smov 64   ;;  %s448_s29 = smov 4  }
  0x12   :  { %34 = dma.hbm_to_vmem [thread:$0]  %s545_s1, 128, %s29_s19, [#allocation7], %s447_s28, %s447_s28, %s448_s29  }
  0x13   :  { %s449_s7 = smov [#allocation3]   ;;  %s450_s9 = smov [#allocation8]  }
  0x14   :  { %s19_s8 = sshll.u32 %s449_s7, 4  ;;  %s42_s10 = sshll.u32 %s450_s9, 4  ;;  %s20_s8 = int_to_ptr.vmem [resolvable:$true] %s19_s8  ;;  %s43_s10 = int_to_ptr.vmem [resolvable:$true] %s42_s10 }
  0x15   :  { %s374_s13 = scalar_lea.hbm %s544_s0, 128 }
  0x16   :  { %p375_p8 = scmp.ne.s32.totalorder %s544_s0, %s374_s13  ;;  %p378_p9 = scmp.lt.u32.totalorder %s374_s13, %s544_s0 }
  0x18   :  { %p380_p10 = pnand %p378_p9, %p375_p8 }
  0x1a   :  { %383 = shalt.err (!%p380_p10)
}
  0x1b   :  { %s384_s1 = scalar_lea.vmem %s20_s8, 128  ;;  %p389_p12 = scmp.lt.s32.totalorder %s20_s8, %s20_s8 }
  0x1c   :  { %p385_p11 = scmp.ne.s32.totalorder %s20_s8, %s384_s1  ;;  %p390_p13 = scmp.lt.s32.totalorder %s384_s1, %s384_s1 }
  0x1e   :  { %p391_p0 = por %p390_p13, %p389_p12 }
  0x20   :  { %p392_p1 = pnand %p391_p0, %p385_p11 }
  0x22   :  { %395 = shalt.err (!%p392_p1)
}
  0x23   :  { %22 = dma.hbm_to_vmem [thread:$0]  %s544_s0, 128, %s20_s8, [#allocation4]  }
  0x24   :  { %s396_s22 = scalar_lea.hbm %s547_s3, 1024 }
  0x25   :  { %p397_p2 = scmp.ne.s32.totalorder %s547_s3, %s396_s22  ;;  %p400_p3 = scmp.lt.u32.totalorder %s396_s22, %s547_s3 }
  0x27   :  { %p402_p4 = pnand %p400_p3, %p397_p2 }
  0x29   :  { %405 = shalt.err (!%p402_p4)
}
  0x2a   :  { %s406_s27 = scalar_lea.vmem %s43_s10, 1024  ;;  %p411_p6 = scmp.lt.s32.totalorder %s43_s10, %s43_s10 }
  0x2b   :  { %p407_p5 = scmp.ne.s32.totalorder %s43_s10, %s406_s27  ;;  %p412_p7 = scmp.lt.s32.totalorder %s406_s27, %s406_s27 }
  0x2d   :  { %p413_p8 = por %p412_p7, %p411_p6 }
  0x2f   :  { %p414_p9 = pnand %p413_p8, %p407_p5 }
  0x31   :  { %417 = shalt.err (!%p414_p9)
}
  0x32   :  { %48 = dma.hbm_to_vmem [thread:$0]  %s547_s3, 1024, %s43_s10, [#allocation7], %s447_s28, %s447_s28, %s448_s29  }
  0x33   :  { %440 = dma.done.wait [#allocation4], 128  }
  0x34   :  { %441 = vsyncadd [#allocation4], 4294967168 }
  0x35   :  { %442 = dma.done.wait [#allocation7], 1152  }
  0x36   :  { %443 = vsyncadd [#allocation7], 4294966144  ;;  %v451_v0 = vmov 0.0   ;;  %vm452_vm0 = vmmov 0   ;;  %v337_v1 = vld [vmem:[#allocation6] sm:$0xff]   ;;  %v66_v2 = vld [vmem:[#allocation3] sm:$0xff] }
  0x37   :  { %303 = vmatprep.subr.bf16.mxu0 %v451_v0  ;;  %305 = vmatprep.mubr.msk.bf16.mxu0 %vm452_vm0, %v451_v0  ;;  %v67_v3 = vpack.c.bf16 %v66_v2, %v66_v2  ;;  %vm83_vm1 = vcmask 130048   ;;  %v338_v4 = vld [vmem:[#allocation8] sm:$0xff]   ;;  %v339_v5 = vld [vmem:[#allocation8 + $0x8] sm:$0xff]   ;;  %v340_v6 = vld [vmem:[#allocation8 + $0x10] sm:$0xff]  }
  0x38   :  { %309 = vmatprep.subr.bf16.mxu1 %v451_v0  ;;  %325 = vmatprep.mubr.msk.bf16.mxu1 %vm452_vm0, %v451_v0  ;;  %v341_v7 = vld [vmem:[#allocation8 + $0x18] sm:$0xff]   ;;  %v342_v8 = vld [vmem:[#allocation8 + $0x20] sm:$0xff]   ;;  %v343_v9 = vld [vmem:[#allocation8 + $0x28] sm:$0xff]  }
  0x39   :  { %304 = vmatpush3.bf16.msra.mxu0 %v337_v1  ;;  %310 = vmatpush3.bf16.msra.mxu1 %v338_v4  ;;  %v344_v10 = vld [vmem:[#allocation8 + $0x30] sm:$0xff]   ;;  %v345_v11 = vld [vmem:[#allocation8 + $0x38] sm:$0xff]  }
  0x3a   :  { %311 = vmatprep.subr.bf16.mxu1 %v451_v0  ;;  %v280_v12 = vld [vmem:[%s546_s2] ss:$0 sm:$0xff]  ;;  %s453_s2 = smov [#allocation9]  }
  0x3b   :  { %v291_v23 = vld [vmem:[%s548_s4] ss:$0 sm:$0xff]  ;;  %s270_s7 = sshll.u32 %s453_s2, 4  ;;  %s271_s7 = int_to_ptr.vmem [resolvable:$true] %s270_s7 }
  0x3c   :  { %306 = vmatmul.mubr.msk.bf16.vlgmr.msra.gmra.mrb[0].mxu0 %vm83_vm1, %v67_v3  ;;  %s418_s4 = scalar_lea.vmem %s271_s7, 128  ;;  %p423_p11 = scmp.lt.s32.totalorder %s271_s7, %s271_s7 }
  0x3d   :  { %312 = vmatpush3.bf16.msra.mxu1 %v339_v5  ;;  %p419_p10 = scmp.ne.s32.totalorder %s271_s7, %s418_s4  ;;  %p424_p12 = scmp.lt.s32.totalorder %s418_s4, %s418_s4 }
  0x3e   :  { %313 = vmatprep.subr.bf16.mxu1 %v451_v0 }
  0x3f   :  { %p425_p13 = por %p424_p12, %p423_p11 }
  0x41   :  { %314 = vmatpush3.bf16.msra.mxu1 %v340_v6  ;;  %p426_p0 = pnand %p425_p13, %p419_p10 }
  0x42   :  { %315 = vmatprep.subr.bf16.mxu1 %v451_v0 }
  0x45   :  { %316 = vmatpush3.bf16.msra.mxu1 %v341_v7 }
  0x46   :  { %317 = vmatprep.subr.bf16.mxu1 %v451_v0 }
  0x49   :  { %318 = vmatpush3.bf16.msra.mxu1 %v342_v8 }
  0x4a   :  { %319 = vmatprep.subr.bf16.mxu1 %v451_v0 }
  0x4d   :  { %320 = vmatpush3.bf16.msra.mxu1 %v343_v9 }
  0x4e   :  { %321 = vmatprep.subr.bf16.mxu1 %v451_v0 }
  0x51   :  { %322 = vmatpush3.bf16.msra.mxu1 %v344_v10 }
  0x52   :  { %323 = vmatprep.subr.bf16.mxu1 %v451_v0 }
  0x55   :  { %324 = vmatpush3.bf16.msra.mxu1 %v345_v11 }
 0x10f   :  { %v121_v13 = vpop.f32.mrb[0].mxu0 }
 0x110   :  { %v122_v14 = vadd.f32 %v280_v12, %v121_v13  ;;  %v307_v15 = vpop.f32.mrb[1].mxu0 }
 0x111   :  { %v124_v16 = vpop.f32.mrb[2].mxu0 }
 0x112   :  { %v127_v17 = vmul.f32 0.5, %v122_v14  ;;  %v308_v18 = vpop.f32.mrb[3].mxu0 }
 0x114   :  { %346 = vtanh.f32 %v127_v17 }
 0x11e   :  { %v347_v19 = vpop.eup %346 }
 0x11f   :  { %v129_v20 = vadd.f32 1.0, %v347_v19 }
 0x121   :  { %v130_v21 = vmul.f32 0.5, %v129_v20 }
 0x123   :  { %v132_v22 = vpack.c.bf16 %v130_v21, %v130_v21 }
 0x125   :  { %326 = vmatmul.mubr.bf16.vlgmr.msra.gmra.mrb[0].mxu1 %v132_v22 }
 0x1f8   :  { %v231_v24 = vpop.f32.mrb[0].mxu1 }
 0x1f9   :  { %v250_v25 = vadd.f32 %v291_v23, %v231_v24  ;;  %v327_v26 = vpop.f32.mrb[1].mxu1 }
 0x1fa   :  { %v234_v27 = vpop.f32.mrb[2].mxu1 }
 0x1fb   :  { %251 = vmax.xlane.f32.xlu0 %v250_v25  ;;  %v328_v28 = vpop.f32.mrb[3].mxu1 }
 0x288   :  { %v252_v29 = vpop.xlane.xlu0 %251 }
 0x289   :  { %v253_v30 = vsub.f32 %v250_v25, %v252_v29 }
 0x28b   :  { %v254_v31 = vmul.f32 1.442695, %v253_v30 }
 0x28d   :  { %348 = vpow2.f32 %v254_v31 }
 0x297   :  { %v349_v32 = vpop.eup %348 }
 0x298   :  { %256 = vadd.xlane.f32.xlu0 %v349_v32 }
 0x325   :  { %v257_v33 = vpop.xlane.xlu0 %256 }
 0x326   :  { %350 = vrcp.f32 %v257_v33 }
 0x330   :  { %v351_v34 = vpop.eup %350 }
 0x331   :  { %v259_v35 = vmul.f32 %v351_v34, %v257_v33 }
 0x333   :  { %v260_v36 = vsub.f32 2.0, %v259_v35 }
 0x335   :  { %v261_v37 = vmul.f32 %v351_v34, %v260_v36 }
 0x337   :  { %v262_v38 = vmul.f32 %v349_v32, %v261_v37 }
 0x339   :  { %263 = vst [vmem:[#allocation9] sm:$0xff] %v262_v38 }
 0x33a   :  { %429 = shalt.err (!%p426_p0)
}
 0x33b   :  { %s430_s10 = scalar_lea.hbm %s549_s5, 128 }
 0x33c   :  { %p431_p1 = scmp.ne.s32.totalorder %s549_s5, %s430_s10  ;;  %p434_p2 = scmp.lt.u32.totalorder %s430_s10, %s549_s5 }
 0x33e   :  { %p436_p3 = pnand %p434_p2, %p431_p1 }
 0x340   :  { %439 = shalt.err (!%p436_p3)
}
 0x341   :  { %273 = dma.vmem_to_hbm [thread:$0]  %s271_s7, 128, %s549_s5, [#allocation5]  }
 0x342   :  { %444 = dma.done.wait [#allocation5], 128  }
 0x343   :  { %445 = vsyncadd [#allocation5], 4294967168 }
 0x344   :  { %277 = vsyncpa [#allocation4], 1 }
 0x345   :  { %278 = vsyncpa [#allocation7], 1 }
 0x346   :  { %279 = vsyncpa [#allocation5], 1 }

</bundles_post_ra>
